<compile_context>
chip_gen: v5e
topology: v5e:2x2
jax: 0.10.0
libtpu: 0.0.40
codegen_flags: <defaults>
</compile_context>

<pallas_src>
import functools

import jax
import jax.numpy as jnp
from jax.experimental import pallas as pl
from jax.experimental.pallas import tpu as pltpu


# ----------------------------- in-kernel helpers -----------------------------

def _layernorm(x, gamma, beta, eps=1e-5):
    # x: (T, dim) f32, gamma/beta: (1, dim) f32  (matches torch.nn.LayerNorm(dim))
    mu = jnp.mean(x, axis=-1, keepdims=True)
    var = jnp.mean((x - mu) ** 2, axis=-1, keepdims=True)
    return (x - mu) * jax.lax.rsqrt(var + eps) * gamma + beta


def _gelu(x):
    # TODO(synk): torch.nn.GELU default is the exact erf GELU; erf is not
    # guaranteed to lower in Mosaic, so the tanh approximation is used
    # (max abs deviation ~1e-3).
    c = jnp.float32(0.7978845608028654)  # sqrt(2/pi)
    return 0.5 * x * (1.0 + jnp.tanh(c * (x + 0.044715 * x * x * x)))


# --------------------------------- kernel ------------------------------------

def transformer_block_kernel(bt, n, nheads, dim_head,
                             x_ref,
                             ln1_g_ref, ln1_b_ref,
                             wqkv_ref, wo_ref, bo_ref,
                             ln2_g_ref, ln2_b_ref,
                             w1_ref, b1_ref, w2_ref, b2_ref,
                             out_ref):
    f32 = jnp.float32
    cdt = wqkv_ref.dtype            # compute dtype for MXU operands (bf16)
    dimD = nheads * dim_head

    x = x_ref[...].astype(f32)      # (Tt, dim) f32, Tt = bt * n tokens

    # ---------------- attention block: LN -> MHSA -> +residual ----------------
    xn = _layernorm(x, ln1_g_ref[...], ln1_b_ref[...])

    # Fused QKV projection: one wide MXU matmul, f32 accumulation.
    qkv = jnp.dot(xn.astype(cdt), wqkv_ref[...],
                  preferred_element_type=f32)            # (Tt, 3*dimD)
    qkv = qkv.astype(cdt)

    # Head-batched attention: split heads into a fused (bt*H) batch axis and do
    # a single score contraction + softmax + context contraction (no per-head
    # Python loop, no lane-axis concat).
    def split_heads(t):              # (Tt, dimD) -> (bt*H, n, Dh)
        t = t.reshape(bt, n, nheads, dim_head)
        t = jnp.transpose(t, (0, 2, 1, 3))               # last dim preserved
        return t.reshape(bt * nheads, n, dim_head)

    q = split_heads(qkv[:, 0 * dimD:1 * dimD])           # q-scale z folded into wq
    k = split_heads(qkv[:, 1 * dimD:2 * dimD])
    v = split_heads(qkv[:, 2 * dimD:3 * dimD])

    s = jnp.einsum('bqd,bkd->bqk', q, k,
                   preferred_element_type=f32)           # (bt*H, n, n)
    s = s - jnp.max(s, axis=-1, keepdims=True)           # stable softmax
    e = jnp.exp(s)
    p = e * pl.reciprocal(jnp.sum(e, axis=-1, keepdims=True), approx=True)
    ctx = jnp.einsum('bqk,bkd->bqd', p.astype(cdt), v,
                     preferred_element_type=f32)         # (bt*H, n, Dh)

    # Merge heads back to lanes: (bt*H, n, Dh) -> (Tt, dimD).
    ctx = ctx.reshape(bt, nheads, n, dim_head)
    ctx = jnp.transpose(ctx, (0, 2, 1, 3)).reshape(bt * n, dimD)

    attn = jnp.dot(ctx.astype(cdt), wo_ref[...],
                   preferred_element_type=f32) + bo_ref[...]
    y = attn + x                                         # residual 1 (f32)

    # -------------- ffn block: LN -> Linear -> GELU -> Linear -> +residual ----
    yn = _layernorm(y, ln2_g_ref[...], ln2_b_ref[...])
    h1 = jnp.dot(yn.astype(cdt), w1_ref[...],
                 preferred_element_type=f32) + b1_ref[...]
    h1 = _gelu(h1)
    h2 = jnp.dot(h1.astype(cdt), w2_ref[...],
                 preferred_element_type=f32) + b2_ref[...]

    out_ref[...] = (h2 + y).astype(out_ref.dtype)        # residual 2 (bf16 stream)


# -------------------------------- wrappers ------------------------------------

def _prep_block_params(p, dim_head, compute_dtype):
    """Fuse/reshape/cast one block's parameters (pure XLA, outside the kernel)."""
    z = dim_head ** -0.5
    # Fold the q-scale into wq and fuse Q/K/V into one (dim, 3*H*Dh) weight;
    # column order is (qkv, head, dh), matching torch's head-major .view().
    wqkv = jnp.concatenate([p["wq"] * z, p["wk"], p["wv"]],
                           axis=1).astype(compute_dtype)
    row = lambda a: a.reshape(1, -1).astype(jnp.float32)
    return [
        row(p["ln1_g"]), row(p["ln1_b"]),
        wqkv,
        p["wo"].astype(compute_dtype), row(p["bo"]),
        row(p["ln2_g"]), row(p["ln2_b"]),
        p["w1"].astype(compute_dtype), row(p["b1"]),
        p["w2"].astype(compute_dtype), row(p["b2"]),
    ]


def _pick_block_batch(bs, n, target_tokens=256):
    """Largest divisor of bs whose token tile (bt*n) stays around target_tokens."""
    cap = max(1, target_tokens // max(n, 1))
    for d in range(min(bs, cap), 0, -1):
        if bs % d == 0:
            return d
    return 1


def transformer_block(x, params, *, nheads, dim_head, block_batch=None,
                      compute_dtype=jnp.bfloat16, stream_dtype=jnp.bfloat16):
    bs, n, dim = x.shape
    bt = block_batch if block_batch is not None else _pick_block_batch(bs, n)
    assert bs % bt == 0, "block_batch must divide the batch size"

    # Residual stream is carried between blocks in bf16 (halves HBM traffic);
    # LN stats / residual math happen in f32 inside the kernel.
    x2 = x.reshape(bs * n, dim).astype(stream_dtype)
    plist = _prep_block_params(params, dim_head, compute_dtype)

    kernel = functools.partial(transformer_block_kernel, bt, n, nheads, dim_head)

    # Activations walk the token slab (batch-aligned tiles so attention stays
    # local to a tile); weights/biases use constant index_maps -> DMA'd once,
    # resident across the whole grid.
    tok_spec = pl.BlockSpec((bt * n, dim), lambda i: (i, 0))
    const_spec = lambda a: pl.BlockSpec(a.shape, lambda i: (0, 0))

    out2 = pl.pallas_call(
        kernel,
        out_shape=jax.ShapeDtypeStruct((bs * n, dim), stream_dtype),
        grid=(bs // bt,),
        in_specs=[tok_spec] + [const_spec(a) for a in plist],
        out_specs=tok_spec,
        compiler_params=pltpu.CompilerParams(
            dimension_semantics=("parallel",),       # megacore on v7x
            vmem_limit_bytes=32 * 1024 * 1024,       # explicit budget; re-derive per chip gen
        ),
    )(x2, *plist)
    return out2.reshape(bs, n, dim)


def transformer(x, layer_params, *, nheads, dim_head, block_batch=None,
                compute_dtype=jnp.bfloat16, stream_dtype=jnp.bfloat16):
    """Transformer.forward: sequentially apply `depth` TransformerBlocks."""
    # TODO(synk): hide per-layer weight DMA behind the previous layer's compute
    # (cross-pallas_call prefetch / emit_pipeline over layers).
    orig_dtype = x.dtype
    for p in layer_params:
        x = transformer_block(x, p, nheads=nheads, dim_head=dim_head,
                              block_batch=block_batch,
                              compute_dtype=compute_dtype,
                              stream_dtype=stream_dtype)
    return x.astype(orig_dtype)


# --------------------------- pure-JAX reference -------------------------------

def transformer_block_ref(x, params, *, nheads, dim_head):
    def ln(v, g, b):
        mu = jnp.mean(v, axis=-1, keepdims=True)
        var = jnp.mean((v - mu) ** 2, axis=-1, keepdims=True)
        return (v - mu) * jax.lax.rsqrt(var + 1e-5) * g + b

    bs, n, dim = x.shape
    xn = ln(x, params["ln1_g"], params["ln1_b"])
    q = (xn @ params["wq"]).reshape(bs, n, nheads, dim_head).transpose(0, 2, 1, 3)
    k = (xn @ params["wk"]).reshape(bs, n, nheads, dim_head).transpose(0, 2, 1, 3)
    v = (xn @ params["wv"]).reshape(bs, n, nheads, dim_head).transpose(0, 2, 1, 3)
    q = q * (dim_head ** -0.5)
    s = jnp.einsum("bhqd,bhkd->bhqk", q, k)
    w = jax.nn.softmax(s, axis=-1)
    ctx = jnp.einsum("bhqk,bhkd->bhqd", w, v).transpose(0, 2, 1, 3).reshape(bs, n, -1)
    attn = ctx @ params["wo"] + params["bo"]
    y = attn + x
    yn = ln(y, params["ln2_g"], params["ln2_b"])
    h1 = _gelu(yn @ params["w1"] + params["b1"])
    return (h1 @ params["w2"] + params["b2"]) + y


def transformer_ref(x, layer_params, *, nheads, dim_head):
    for p in layer_params:
        x = transformer_block_ref(x, p, nheads=nheads, dim_head=dim_head)
    return x


# ---------------------------------- main --------------------------------------

if __name__ == "__main__":
    # Small shapes consistent with the module's forward: (bs, n, dim) tokens.
    depth = 2
    bs, n, dim = 2, 8, 32
    nheads, dim_head = 4, 16           # dimD = 64
    hidden_dim = 64

    key = jax.random.PRNGKey(0)
    dimD = nheads * dim_head
    scale = 0.02

    def make_block_params(k):
        ks = jax.random.split(k, 6)
        return {
            "ln1_g": jnp.ones((dim,), jnp.float32),
            "ln1_b": jnp.zeros((dim,), jnp.float32),
            "wq": scale * jax.random.normal(ks[0], (dim, dimD), jnp.float32),
            "wk": scale * jax.random.normal(ks[1], (dim, dimD), jnp.float32),
            "wv": scale * jax.random.normal(ks[2], (dim, dimD), jnp.float32),
            "wo": scale * jax.random.normal(ks[3], (dimD, dim), jnp.float32),
            "bo": jnp.zeros((dim,), jnp.float32),
            "ln2_g": jnp.ones((dim,), jnp.float32),
            "ln2_b": jnp.zeros((dim,), jnp.float32),
            "w1": scale * jax.random.normal(ks[4], (dim, hidden_dim), jnp.float32),
            "b1": 0.1 * jnp.ones((hidden_dim,), jnp.float32),
            "w2": scale * jax.random.normal(ks[5], (hidden_dim, dim), jnp.float32),
            "b2": 0.1 * jnp.ones((dim,), jnp.float32),
        }

    keys = jax.random.split(key, depth + 1)
    layer_params = [make_block_params(keys[i]) for i in range(depth)]
    x = jax.random.normal(keys[-1], (bs, n, dim), jnp.float32)

    # block_batch=1 -> grid=(2,): exercises the token-tile pipeline + parallel axis.
    out = transformer(x, layer_params, nheads=nheads, dim_head=dim_head,
                      block_batch=1)
    out = jax.block_until_ready(out)

    ref = transformer_ref(x, layer_params, nheads=nheads, dim_head=dim_head)
    assert out.shape == (bs, n, dim)
    assert jnp.allclose(out, ref, rtol=2e-2, atol=2e-2), "mismatch vs JAX reference"

    print("KERNEL_OK")
</pallas_src>

<mosaic_0001>
module attributes {stable_mosaic.version = 11 : i64} {
  func.func @transformer_block_kernel(%arg0: i32, %arg1: memref<8x32xbf16, #tpu.memory_space<vmem>>, %arg2: memref<1x32xf32, #tpu.memory_space<vmem>>, %arg3: memref<1x32xf32, #tpu.memory_space<vmem>>, %arg4: memref<32x192xbf16, #tpu.memory_space<vmem>>, %arg5: memref<64x32xbf16, #tpu.memory_space<vmem>>, %arg6: memref<1x32xf32, #tpu.memory_space<vmem>>, %arg7: memref<1x32xf32, #tpu.memory_space<vmem>>, %arg8: memref<1x32xf32, #tpu.memory_space<vmem>>, %arg9: memref<32x64xbf16, #tpu.memory_space<vmem>>, %arg10: memref<1x64xf32, #tpu.memory_space<vmem>>, %arg11: memref<64x32xbf16, #tpu.memory_space<vmem>>, %arg12: memref<1x32xf32, #tpu.memory_space<vmem>>, %arg13: memref<8x32xbf16, #tpu.memory_space<vmem>>) attributes {dimension_semantics = [#tpu.dimension_semantics<parallel>], iteration_bounds = array<i64: 2>, scalar_prefetch = 0 : i64, scratch_operands = 0 : i64, tpu.core_type = #tpu.core_type<tc>, window_params = [{transform_indices = @transform_0, window_bounds = array<i64: 8, 32>}, {pipeline_mode = #tpu.pipeline_mode<synchronous>, transform_indices = @transform_1, window_bounds = array<i64: 1, 32>}, {pipeline_mode = #tpu.pipeline_mode<synchronous>, transform_indices = @transform_2, window_bounds = array<i64: 1, 32>}, {pipeline_mode = #tpu.pipeline_mode<synchronous>, transform_indices = @transform_3, window_bounds = array<i64: 32, 192>}, {pipeline_mode = #tpu.pipeline_mode<synchronous>, transform_indices = @transform_4, window_bounds = array<i64: 64, 32>}, {pipeline_mode = #tpu.pipeline_mode<synchronous>, transform_indices = @transform_5, window_bounds = array<i64: 1, 32>}, {pipeline_mode = #tpu.pipeline_mode<synchronous>, transform_indices = @transform_6, window_bounds = array<i64: 1, 32>}, {pipeline_mode = #tpu.pipeline_mode<synchronous>, transform_indices = @transform_7, window_bounds = array<i64: 1, 32>}, {pipeline_mode = #tpu.pipeline_mode<synchronous>, transform_indices = @transform_8, window_bounds = array<i64: 32, 64>}, {pipeline_mode = #tpu.pipeline_mode<synchronous>, transform_indices = @transform_9, window_bounds = array<i64: 1, 64>}, {pipeline_mode = #tpu.pipeline_mode<synchronous>, transform_indices = @transform_10, window_bounds = array<i64: 64, 32>}, {pipeline_mode = #tpu.pipeline_mode<synchronous>, transform_indices = @transform_11, window_bounds = array<i64: 1, 32>}, {transform_indices = @transform_12, window_bounds = array<i64: 8, 32>}]} {
    %c0 = arith.constant 0 : index
    %c0_0 = arith.constant 0 : index
    %0 = vector.load %arg1[%c0, %c0_0] : memref<8x32xbf16, #tpu.memory_space<vmem>>, vector<8x32xbf16>
    %1 = arith.extf %0 : vector<8x32xbf16> to vector<8x32xf32>
    %c0_1 = arith.constant 0 : index
    %c0_2 = arith.constant 0 : index
    %2 = vector.load %arg2[%c0_1, %c0_2] : memref<1x32xf32, #tpu.memory_space<vmem>>, vector<1x32xf32>
    %c0_3 = arith.constant 0 : index
    %c0_4 = arith.constant 0 : index
    %3 = vector.load %arg3[%c0_3, %c0_4] : memref<1x32xf32, #tpu.memory_space<vmem>>, vector<1x32xf32>
    %cst = arith.constant dense<0.000000e+00> : vector<8xf32>
    %4 = vector.multi_reduction <add>, %1, %cst [1] : vector<8x32xf32> to vector<8xf32>
    %5 = vector.shape_cast %4 : vector<8xf32> to vector<8x1xf32>
    %cst_5 = arith.constant 3.200000e+01 : f32
    %6 = vector.broadcast %cst_5 : f32 to vector<8x1xf32>
    %7 = arith.divf %5, %6 : vector<8x1xf32>
    %8 = vector.broadcast %7 : vector<8x1xf32> to vector<8x32xf32>
    %9 = arith.subf %1, %8 : vector<8x32xf32>
    %10 = arith.mulf %9, %9 : vector<8x32xf32>
    %cst_6 = arith.constant dense<0.000000e+00> : vector<8xf32>
    %11 = vector.multi_reduction <add>, %10, %cst_6 [1] : vector<8x32xf32> to vector<8xf32>
    %12 = vector.shape_cast %11 : vector<8xf32> to vector<8x1xf32>
    %cst_7 = arith.constant 3.200000e+01 : f32
    %13 = vector.broadcast %cst_7 : f32 to vector<8x1xf32>
    %14 = arith.divf %12, %13 : vector<8x1xf32>
    %15 = vector.broadcast %7 : vector<8x1xf32> to vector<8x32xf32>
    %16 = arith.subf %1, %15 : vector<8x32xf32>
    %cst_8 = arith.constant 9.99999974E-6 : f32
    %17 = vector.broadcast %cst_8 : f32 to vector<8x1xf32>
    %18 = arith.addf %14, %17 : vector<8x1xf32>
    %19 = math.rsqrt %18 : vector<8x1xf32>
    %20 = vector.broadcast %19 : vector<8x1xf32> to vector<8x32xf32>
    %21 = arith.mulf %16, %20 : vector<8x32xf32>
    %22 = vector.broadcast %2 : vector<1x32xf32> to vector<8x32xf32>
    %23 = arith.mulf %21, %22 : vector<8x32xf32>
    %24 = vector.broadcast %3 : vector<1x32xf32> to vector<8x32xf32>
    %25 = arith.addf %23, %24 : vector<8x32xf32>
    %26 = arith.truncf %25 : vector<8x32xf32> to vector<8x32xbf16>
    %c0_9 = arith.constant 0 : index
    %c0_10 = arith.constant 0 : index
    %27 = vector.load %arg4[%c0_9, %c0_10] : memref<32x192xbf16, #tpu.memory_space<vmem>>, vector<32x192xbf16>
    %cst_11 = arith.constant dense<0.000000e+00> : vector<8x192xf32>
    %28 = tpu.matmul %26, %27, %cst_11 {dimension_numbers = #tpu.dot_dimension_numbers<[1], [0], [0], [1], [0, 0, 1, 1], [], []>} : vector<8x32xbf16>, vector<32x192xbf16>, vector<8x192xf32> -> vector<8x192xf32>
    %29 = arith.truncf %28 : vector<8x192xf32> to vector<8x192xbf16>
    %30 = vector.extract_strided_slice %29 {offsets = [0, 0], sizes = [8, 64], strides = [1, 1]} : vector<8x192xbf16> to vector<8x64xbf16>
    %31 = vector.shape_cast %30 : vector<8x64xbf16> to vector<1x8x4x16xbf16>
    %32 = tpu.transpose %31, [0, 2, 1, 3] : vector<1x8x4x16xbf16> -> vector<1x4x8x16xbf16>
    %33 = vector.shape_cast %32 : vector<1x4x8x16xbf16> to vector<4x8x16xbf16>
    %34 = vector.extract_strided_slice %29 {offsets = [0, 64], sizes = [8, 64], strides = [1, 1]} : vector<8x192xbf16> to vector<8x64xbf16>
    %35 = vector.shape_cast %34 : vector<8x64xbf16> to vector<1x8x4x16xbf16>
    %36 = tpu.transpose %35, [0, 2, 1, 3] : vector<1x8x4x16xbf16> -> vector<1x4x8x16xbf16>
    %37 = vector.shape_cast %36 : vector<1x4x8x16xbf16> to vector<4x8x16xbf16>
    %38 = vector.extract_strided_slice %29 {offsets = [0, 128], sizes = [8, 64], strides = [1, 1]} : vector<8x192xbf16> to vector<8x64xbf16>
    %39 = vector.shape_cast %38 : vector<8x64xbf16> to vector<1x8x4x16xbf16>
    %40 = tpu.transpose %39, [0, 2, 1, 3] : vector<1x8x4x16xbf16> -> vector<1x4x8x16xbf16>
    %41 = vector.shape_cast %40 : vector<1x4x8x16xbf16> to vector<4x8x16xbf16>
    "tpu.trace_start"() <{level = 10 : i32, message = "bqd,bkd->bqk"}> : () -> ()
    %cst_12 = arith.constant dense<0.000000e+00> : vector<4x8x8xf32>
    %42 = tpu.matmul %33, %37, %cst_12 {dimension_numbers = #tpu.dot_dimension_numbers<[2], [2], [1], [1], [0, 0, 0, 1, 1, 1], [0], [0]>} : vector<4x8x16xbf16>, vector<4x8x16xbf16>, vector<4x8x8xf32> -> vector<4x8x8xf32>
    "tpu.trace_stop"() : () -> ()
    %cst_13 = arith.constant dense<0xFF800000> : vector<4x8xf32>
    %43 = vector.multi_reduction <maximumf>, %42, %cst_13 [2] : vector<4x8x8xf32> to vector<4x8xf32>
    %44 = vector.shape_cast %43 : vector<4x8xf32> to vector<4x8x1xf32>
    %45 = vector.broadcast %44 : vector<4x8x1xf32> to vector<4x8x8xf32>
    %46 = arith.subf %42, %45 : vector<4x8x8xf32>
    %47 = math.exp %46 : vector<4x8x8xf32>
    %cst_14 = arith.constant dense<0.000000e+00> : vector<4x8xf32>
    %48 = vector.multi_reduction <add>, %47, %cst_14 [2] : vector<4x8x8xf32> to vector<4x8xf32>
    %49 = vector.shape_cast %48 : vector<4x8xf32> to vector<4x8x1xf32>
    %50 = tpu.reciprocal %49 {approx = true} : vector<4x8x1xf32> -> vector<4x8x1xf32>
    %51 = vector.broadcast %50 : vector<4x8x1xf32> to vector<4x8x8xf32>
    %52 = arith.mulf %47, %51 : vector<4x8x8xf32>
    %53 = arith.truncf %52 : vector<4x8x8xf32> to vector<4x8x8xbf16>
    "tpu.trace_start"() <{level = 10 : i32, message = "bqk,bkd->bqd"}> : () -> ()
    %cst_15 = arith.constant dense<0.000000e+00> : vector<4x8x16xf32>
    %54 = tpu.matmul %53, %41, %cst_15 {dimension_numbers = #tpu.dot_dimension_numbers<[2], [1], [1], [2], [0, 0, 0, 1, 1, 2], [0], [0]>} : vector<4x8x8xbf16>, vector<4x8x16xbf16>, vector<4x8x16xf32> -> vector<4x8x16xf32>
    "tpu.trace_stop"() : () -> ()
    %55 = vector.shape_cast %54 : vector<4x8x16xf32> to vector<1x4x8x16xf32>
    %56 = tpu.transpose %55, [0, 2, 1, 3] : vector<1x4x8x16xf32> -> vector<1x8x4x16xf32>
    %57 = vector.shape_cast %56 : vector<1x8x4x16xf32> to vector<8x64xf32>
    %58 = arith.truncf %57 : vector<8x64xf32> to vector<8x64xbf16>
    %c0_16 = arith.constant 0 : index
    %c0_17 = arith.constant 0 : index
    %59 = vector.load %arg5[%c0_16, %c0_17] : memref<64x32xbf16, #tpu.memory_space<vmem>>, vector<64x32xbf16>
    %cst_18 = arith.constant dense<0.000000e+00> : vector<8x32xf32>
    %60 = tpu.matmul %58, %59, %cst_18 {dimension_numbers = #tpu.dot_dimension_numbers<[1], [0], [0], [1], [0, 0, 1, 1], [], []>} : vector<8x64xbf16>, vector<64x32xbf16>, vector<8x32xf32> -> vector<8x32xf32>
    %c0_19 = arith.constant 0 : index
    %c0_20 = arith.constant 0 : index
    %61 = vector.load %arg6[%c0_19, %c0_20] : memref<1x32xf32, #tpu.memory_space<vmem>>, vector<1x32xf32>
    %62 = vector.broadcast %61 : vector<1x32xf32> to vector<8x32xf32>
    %63 = arith.addf %60, %62 : vector<8x32xf32>
    %64 = arith.addf %63, %1 : vector<8x32xf32>
    %c0_21 = arith.constant 0 : index
    %c0_22 = arith.constant 0 : index
    %65 = vector.load %arg7[%c0_21, %c0_22] : memref<1x32xf32, #tpu.memory_space<vmem>>, vector<1x32xf32>
    %c0_23 = arith.constant 0 : index
    %c0_24 = arith.constant 0 : index
    %66 = vector.load %arg8[%c0_23, %c0_24] : memref<1x32xf32, #tpu.memory_space<vmem>>, vector<1x32xf32>
    %cst_25 = arith.constant dense<0.000000e+00> : vector<8xf32>
    %67 = vector.multi_reduction <add>, %64, %cst_25 [1] : vector<8x32xf32> to vector<8xf32>
    %68 = vector.shape_cast %67 : vector<8xf32> to vector<8x1xf32>
    %cst_26 = arith.constant 3.200000e+01 : f32
    %69 = vector.broadcast %cst_26 : f32 to vector<8x1xf32>
    %70 = arith.divf %68, %69 : vector<8x1xf32>
    %71 = vector.broadcast %70 : vector<8x1xf32> to vector<8x32xf32>
    %72 = arith.subf %64, %71 : vector<8x32xf32>
    %73 = arith.mulf %72, %72 : vector<8x32xf32>
    %cst_27 = arith.constant dense<0.000000e+00> : vector<8xf32>
    %74 = vector.multi_reduction <add>, %73, %cst_27 [1] : vector<8x32xf32> to vector<8xf32>
    %75 = vector.shape_cast %74 : vector<8xf32> to vector<8x1xf32>
    %cst_28 = arith.constant 3.200000e+01 : f32
    %76 = vector.broadcast %cst_28 : f32 to vector<8x1xf32>
    %77 = arith.divf %75, %76 : vector<8x1xf32>
    %78 = vector.broadcast %70 : vector<8x1xf32> to vector<8x32xf32>
    %79 = arith.subf %64, %78 : vector<8x32xf32>
    %cst_29 = arith.constant 9.99999974E-6 : f32
    %80 = vector.broadcast %cst_29 : f32 to vector<8x1xf32>
    %81 = arith.addf %77, %80 : vector<8x1xf32>
    %82 = math.rsqrt %81 : vector<8x1xf32>
    %83 = vector.broadcast %82 : vector<8x1xf32> to vector<8x32xf32>
    %84 = arith.mulf %79, %83 : vector<8x32xf32>
    %85 = vector.broadcast %65 : vector<1x32xf32> to vector<8x32xf32>
    %86 = arith.mulf %84, %85 : vector<8x32xf32>
    %87 = vector.broadcast %66 : vector<1x32xf32> to vector<8x32xf32>
    %88 = arith.addf %86, %87 : vector<8x32xf32>
    %89 = arith.truncf %88 : vector<8x32xf32> to vector<8x32xbf16>
    %c0_30 = arith.constant 0 : index
    %c0_31 = arith.constant 0 : index
    %90 = vector.load %arg9[%c0_30, %c0_31] : memref<32x64xbf16, #tpu.memory_space<vmem>>, vector<32x64xbf16>
    %cst_32 = arith.constant dense<0.000000e+00> : vector<8x64xf32>
    %91 = tpu.matmul %89, %90, %cst_32 {dimension_numbers = #tpu.dot_dimension_numbers<[1], [0], [0], [1], [0, 0, 1, 1], [], []>} : vector<8x32xbf16>, vector<32x64xbf16>, vector<8x64xf32> -> vector<8x64xf32>
    %c0_33 = arith.constant 0 : index
    %c0_34 = arith.constant 0 : index
    %92 = vector.load %arg10[%c0_33, %c0_34] : memref<1x64xf32, #tpu.memory_space<vmem>>, vector<1x64xf32>
    %93 = vector.broadcast %92 : vector<1x64xf32> to vector<8x64xf32>
    %94 = arith.addf %91, %93 : vector<8x64xf32>
    %cst_35 = arith.constant 5.000000e-01 : f32
    %95 = vector.broadcast %cst_35 : f32 to vector<8x64xf32>
    %96 = arith.mulf %95, %94 : vector<8x64xf32>
    %cst_36 = arith.constant 4.471500e-02 : f32
    %97 = vector.broadcast %cst_36 : f32 to vector<8x64xf32>
    %98 = arith.mulf %97, %94 : vector<8x64xf32>
    %99 = arith.mulf %98, %94 : vector<8x64xf32>
    %100 = arith.mulf %99, %94 : vector<8x64xf32>
    %101 = arith.addf %94, %100 : vector<8x64xf32>
    %cst_37 = arith.constant 0.797884583 : f32
    %102 = vector.broadcast %cst_37 : f32 to vector<8x64xf32>
    %103 = arith.mulf %102, %101 : vector<8x64xf32>
    %104 = math.tanh %103 : vector<8x64xf32>
    %cst_38 = arith.constant 1.000000e+00 : f32
    %105 = vector.broadcast %cst_38 : f32 to vector<8x64xf32>
    %106 = arith.addf %105, %104 : vector<8x64xf32>
    %107 = arith.mulf %96, %106 : vector<8x64xf32>
    %108 = arith.truncf %107 : vector<8x64xf32> to vector<8x64xbf16>
    %c0_39 = arith.constant 0 : index
    %c0_40 = arith.constant 0 : index
    %109 = vector.load %arg11[%c0_39, %c0_40] : memref<64x32xbf16, #tpu.memory_space<vmem>>, vector<64x32xbf16>
    %cst_41 = arith.constant dense<0.000000e+00> : vector<8x32xf32>
    %110 = tpu.matmul %108, %109, %cst_41 {dimension_numbers = #tpu.dot_dimension_numbers<[1], [0], [0], [1], [0, 0, 1, 1], [], []>} : vector<8x64xbf16>, vector<64x32xbf16>, vector<8x32xf32> -> vector<8x32xf32>
    %c0_42 = arith.constant 0 : index
    %c0_43 = arith.constant 0 : index
    %111 = vector.load %arg12[%c0_42, %c0_43] : memref<1x32xf32, #tpu.memory_space<vmem>>, vector<1x32xf32>
    %112 = vector.broadcast %111 : vector<1x32xf32> to vector<8x32xf32>
    %113 = arith.addf %110, %112 : vector<8x32xf32>
    %114 = arith.addf %113, %64 : vector<8x32xf32>
    %115 = arith.truncf %114 : vector<8x32xf32> to vector<8x32xbf16>
    %c0_44 = arith.constant 0 : index
    %c0_45 = arith.constant 0 : index
    %116 = vector.load %arg13[%c0_44, %c0_45] : memref<8x32xbf16, #tpu.memory_space<vmem>>, vector<8x32xbf16>
    tpu.vector_store %arg13[%c0_44, %c0_45], %115 {strides = array<i32>} : memref<8x32xbf16, #tpu.memory_space<vmem>>, vector<8x32xbf16>,
    return
  }
  func.func @transform_0(%arg0: i32) -> (i32, i32) {
    %c0_i32 = arith.constant 0 : i32
    %c0_i32_0 = arith.constant 0 : i32
    return %arg0, %c0_i32 : i32, i32
  }
  func.func @transform_1(%arg0: i32) -> (i32, i32) {
    %c0_i32 = arith.constant 0 : i32
    %c0_i32_0 = arith.constant 0 : i32
    %c0_i32_1 = arith.constant 0 : i32
    return %c0_i32, %c0_i32_0 : i32, i32
  }
  func.func @transform_2(%arg0: i32) -> (i32, i32) {
    %c0_i32 = arith.constant 0 : i32
    %c0_i32_0 = arith.constant 0 : i32
    %c0_i32_1 = arith.constant 0 : i32
    return %c0_i32, %c0_i32_0 : i32, i32
  }
  func.func @transform_3(%arg0: i32) -> (i32, i32) {
    %c0_i32 = arith.constant 0 : i32
    %c0_i32_0 = arith.constant 0 : i32
    %c0_i32_1 = arith.constant 0 : i32
    return %c0_i32, %c0_i32_0 : i32, i32
  }
  func.func @transform_4(%arg0: i32) -> (i32, i32) {
    %c0_i32 = arith.constant 0 : i32
    %c0_i32_0 = arith.constant 0 : i32
    %c0_i32_1 = arith.constant 0 : i32
    return %c0_i32, %c0_i32_0 : i32, i32
  }
  func.func @transform_5(%arg0: i32) -> (i32, i32) {
    %c0_i32 = arith.constant 0 : i32
    %c0_i32_0 = arith.constant 0 : i32
    %c0_i32_1 = arith.constant 0 : i32
    return %c0_i32, %c0_i32_0 : i32, i32
  }
  func.func @transform_6(%arg0: i32) -> (i32, i32) {
    %c0_i32 = arith.constant 0 : i32
    %c0_i32_0 = arith.constant 0 : i32
    %c0_i32_1 = arith.constant 0 : i32
    return %c0_i32, %c0_i32_0 : i32, i32
  }
  func.func @transform_7(%arg0: i32) -> (i32, i32) {
    %c0_i32 = arith.constant 0 : i32
    %c0_i32_0 = arith.constant 0 : i32
    %c0_i32_1 = arith.constant 0 : i32
    return %c0_i32, %c0_i32_0 : i32, i32
  }
  func.func @transform_8(%arg0: i32) -> (i32, i32) {
    %c0_i32 = arith.constant 0 : i32
    %c0_i32_0 = arith.constant 0 : i32
    %c0_i32_1 = arith.constant 0 : i32
    return %c0_i32, %c0_i32_0 : i32, i32
  }
  func.func @transform_9(%arg0: i32) -> (i32, i32) {
    %c0_i32 = arith.constant 0 : i32
    %c0_i32_0 = arith.constant 0 : i32
    %c0_i32_1 = arith.constant 0 : i32
    return %c0_i32, %c0_i32_0 : i32, i32
  }
  func.func @transform_10(%arg0: i32) -> (i32, i32) {
    %c0_i32 = arith.constant 0 : i32
    %c0_i32_0 = arith.constant 0 : i32
    %c0_i32_1 = arith.constant 0 : i32
    return %c0_i32, %c0_i32_0 : i32, i32
  }
  func.func @transform_11(%arg0: i32) -> (i32, i32) {
    %c0_i32 = arith.constant 0 : i32
    %c0_i32_0 = arith.constant 0 : i32
    %c0_i32_1 = arith.constant 0 : i32
    return %c0_i32, %c0_i32_0 : i32, i32
  }
  func.func @transform_12(%arg0: i32) -> (i32, i32) {
    %c0_i32 = arith.constant 0 : i32
    %c0_i32_0 = arith.constant 0 : i32
    return %arg0, %c0_i32 : i32, i32
  }
}

</mosaic_0001>

<bundles_post_ra>
// kernel: tpu_custom_call.1
= control target key start
LH: loop header
LB: loop body
LE: loop exit
PB: predicated region body
PF: predicated region fallthrough
CT: control target
= control target key end

     0   :  { %s2185_s0 = inlined_call_operand.vmem [shape: bf16[16,32], index: 0, kind: input, shape index: {}]   ;;  %s2186_s1 = inlined_call_operand.vmem [shape: f32[1,32], index: 1, kind: input, shape index: {}]   ;;  %s2187_s2 = inlined_call_operand.vmem [shape: f32[1,32], index: 2, kind: input, shape index: {}]   ;;  %s2188_s3 = inlined_call_operand.vmem [shape: bf16[32,192], index: 3, kind: input, shape index: {}]   ;;  %s2189_s4 = inlined_call_operand.vmem [shape: bf16[64,32], index: 4, kind: input, shape index: {}]   ;;  %s2190_s5 = inlined_call_operand.vmem [shape: f32[1,32], index: 5, kind: input, shape index: {}]   ;;  %s2191_s6 = inlined_call_operand.vmem [shape: f32[1,32], index: 6, kind: input, shape index: {}]   ;;  %s2192_s7 = inlined_call_operand.vmem [shape: f32[1,32], index: 7, kind: input, shape index: {}]   ;;  %s2193_s8 = inlined_call_operand.vmem [shape: bf16[32,64], index: 8, kind: input, shape index: {}]   ;;  %s2194_s9 = inlined_call_operand.vmem [shape: f32[1,64], index: 9, kind: input, shape index: {}]   ;;  %s2195_s10 = inlined_call_operand.vmem [shape: bf16[64,32], index: 10, kind: input, shape index: {}]   ;;  %s2196_s11 = inlined_call_operand.vmem [shape: f32[1,32], index: 11, kind: input, shape index: {}]   ;;  %s2197_s12 = inlined_call_operand.hbm [shape: bf16[16,32], index: 12, kind: output, shape index: {}]  }
   0x1   :  { %2198 = sst [smem:[#allocation6_spill]] %s2185_s0 }
   0x2   :  { %17 = vsyncpa [#allocation3], 0 }
   0x3   :  { %19 = vsyncpa [#allocation3 + $0x1], 0  ;;  %s1776_s21 = smov 0   ;;  %s1778_s22 = smov 0  }
   0x4   :  { %s1780_s23 = smov 0   ;;  %s1782_s24 = smov 0  }
   0x5 LB: > { %s1797_s25 = sadd.s32 4294967295, %s1699_s24   ;;  %s1464_s26 = sadd.s32 4294967294, %s1699_s24   ;;  %s1699_s24 = sphi %s1782_s24, %s2207_s24   ;;  %s1695_s23 = sphi %s1780_s23, %s2206_s23   ;;  %s1691_s22 = sphi %s1778_s22, %s2205_s22   ;;  %s1687_s21 = sphi %s1776_s21, %s2204_s21  }
   0x6   : > { %s1801_s27 = sadd.s32 1, %s1699_s24   ;;  %s289_s28 = sadd.s32 1, %s1695_s23 }
   0x7   : > { %s286_s29 = ssub.s32 %s1699_s24, %s1801_s27  ;;  %p299_p0 = scmp.ne.s32.totalorder %s1695_s23, %s1691_s22 }
   0x8   : > { %p287_p1 = scmp.eq.s32.totalorder %s286_s29, 0  ;;  %p300_p2 = scmp.eq.s32.totalorder %s1797_s25, 1 }
   0x9   : > { %p305_p3 = scmp.ne.s32.totalorder %s1691_s22, %s1687_s21  ;;  %p306_p4 = scmp.eq.s32.totalorder %s1464_s26, 1 }
   0xa   : > { %s1812_s30 = scalar_select %p287_p1, %s1695_s23, %s289_s28  }
   0xb   : > { %p1814_p5 = por %p300_p2, %p299_p0  ;;  %p1818_p6 = por %p306_p4, %p305_p3 }
   0xc   : > { %2199 = sst [smem:[#allocation5_spill]] %s1812_s30  ;;  %p1467_p7 = scmp.ge.s32.totalorder %s1699_s24, 1 }
   0xd   : > { %p364_p8 = scmp.lt.s32.totalorder %s1699_s24, 3 }
   0xf   : > { %p365_p9 = pnand %p1467_p7, %p364_p8 }
  0x10   : > { %p405_p10 = scmp.lt.s32.totalorder (!%p365_p9), %s1797_s25, 1  ;;  %s2202_s0 = sld [smem:[#allocation6_spill]] (!%p365_p9) }
  0x11   : > { %368 = sbr.rel (%p365_p9) target bundleno = 2060 (0x80c), region = 68  ;;  %s1702_s18 = smov (!%p365_p9), 80  }
  0x12   : > { %s1704_s20 = smov (!%p365_p9), 64   ;;  %s1705_s26 = smov (!%p365_p9), 96  }
  0x13   : > { %s1708_s28 = smov (!%p365_p9), 32   ;;  %s1709_s29 = smov (!%p365_p9), 48  }
  0x16   : > { %s406_s15 = scalar_select %p405_p10, %s1797_s25, 1  ;;  %vm414_vm0 = vcmask 261120   ;;  %v1701_v3 = vmov 32.0   ;;  %v1480_v15 = vld [vmem:[%s2188_s3 + $0x10] sm:$0xf]  ;;  %vm537_vm5 = vcmask 1047556  }
  0x17   : > { %1613 = vrcp.f32 %v1701_v3  ;;  %v1546_v16 = vld [vmem:[%s2188_s3 + $0x14] sm:$0xf0]  ;;  %v1545_v17 = vld [vmem:[%s2188_s3 + $0x14] sm:$0xf]  ;;  %v1482_v19 = vld [vmem:[%s2188_s3 + $0x18] sm:$0xf0] }
  0x18   : > { %s1469_s16 = sshll.u32 %s406_s15, 2  ;;  %v1481_v18 = vor.u32 %v1546_v16, %v1480_v15  ;;  %v1472_v20 = vld [vmem:[%s2188_s3] sm:$0xf]  ;;  %v1544_v21 = vld [vmem:[%s2188_s3 + $0x4] sm:$0xf0]  ;;  %v1485_v22 = vor.u32 %v1545_v17, %v1482_v19  ;;  %vm869_vm6 = vcmask 130048  }
  0x19   : > { %s408_s19 = scalar_lea.vmem %s2202_s0, %s1469_s16  ;;  %v1543_v23 = vld [vmem:[%s2188_s3 + $0x4] sm:$0xf]  ;;  %v1474_v24 = vld [vmem:[%s2188_s3 + $0x8] sm:$0xf0]  ;;  %v1473_v25 = vor.u32 %v1544_v21, %v1472_v20  ;;  %v1606_v36 = vld [vmem:[%s2186_s1] ss:$0 sm:$0xff] }
  0x1a   : > { %v410_v0 = vld [vmem:[%s408_s19] sm:$0xf]  ;;  %486 = vmatpush.bf16.msra.mxu0 %v1481_v18  ;;  %499 = vmatpush.bf16.msra.mxu1 %v1485_v22  ;;  %v1477_v26 = vor.u32 %v1543_v23, %v1474_v24  ;;  %s1703_s19 = smov 112   ;;  %v1706_v49 = vmov 1983009808   ;;  %vm998_vm7 = vcmask 1043456  }
  0x1b   : > { %v1829_v1 = vunpack.c.l.bf16 %v410_v0  ;;  %v1607_v39 = vld [vmem:[%s2187_s2] ss:$0 sm:$0xff]  ;;  %v528_v50 = vunpack.c.l.s4 %v1706_v49  ;;  %vm946_vm8 = vcmask 64512   ;;  %s1710_s15 = smov 16   ;;  %vm1197_vm9 = vcmask 392192   ;;  %s1657_s0 = scalar_lea.hbm %s2197_s12, 8 }
  0x1c   : > { %vm1236_vm10 = vcmask 523264   ;;  %vm1387_vm14 = vcmask 257024  }
  0x1d   : > { %v415_v2 = vsel %vm414_vm0, %v1829_v1, 0.0  ;;  %v1614_v4 = vpop.eup %1613  ;;  %v1874_v55 = vunpack.c.0.s8 %v528_v50 }
  0x1e   : > { %416 = vadd.xlane.f32.xlu0 %v415_v2  ;;  %v419_v5 = vmul.f32 32.0, %v1614_v4  ;;  %vm423_vm1 = vweird.f32 %v1614_v4  ;;  %487 = vmatpush.bf16.msra.mxu0 %v1473_v25  ;;  %v1707_v2 = vmov 1934713408  }
  0x1f   : > { %500 = vmatpush.bf16.msra.mxu1 %v1477_v26  ;;  %v542_v3 = vunpack.c.l.s4 %v1707_v2 }
  0x20   : > { %v420_v6 = vsub.f32 1.0, %v419_v5 }
  0x21   : > { %v1881_v15 = vunpack.c.0.s8 %v542_v3 }
  0x22   : > { %v421_v7 = vmul.f32 %v1614_v4, %v420_v6 }
  0x24   : > { %v422_v8 = vadd.f32 %v1614_v4, %v421_v7 }
  0x26   : > { %v1833_v9 = vsel %vm423_vm1, %v1614_v4, %v422_v8 }
  0x91   : > { %v417_v10 = vpop.xlane.xlu0 %416 }
  0x92   : > { %v425_v11 = vmul.f32 %v1833_v9, %v417_v10 }
  0x94   : > { %v426_v12 = vsub.f32 %v1829_v1, %v425_v11 }
  0x96   : > { %v427_v13 = vmul.f32 %v426_v12, %v426_v12 }
  0x98   : > { %v428_v14 = vsel %vm414_vm0, %v427_v13, 0.0 }
  0x99   : > { %429 = vadd.xlane.f32.xlu0 %v428_v14 }
 0x10c   : > { %v430_v27 = vpop.xlane.xlu0 %429 }
 0x10d   : > { %v431_v28 = vmul.f32 %v430_v27, %v1833_v9 }
 0x10f   : > { %v432_v29 = vadd.f32 1e-05, %v431_v28 }
 0x111   : > { %1615 = vrsqrt.f32 %v432_v29  ;;  %vm439_vm3 = vweird.f32 %v432_v29 }
 0x117   : > { %v1616_v30 = vpop.eup %1615 }
 0x118   : > { %v434_v31 = vmul.f32 %v1616_v30, %v432_v29  ;;  %vm440_vm2 = vweird.f32 %v1616_v30 }
 0x119   : > { %vm441_vm4 = vmor %vm439_vm3, %vm440_vm2 }
 0x11a   : > { %v435_v32 = vmul.f32 %v1616_v30, %v434_v31 }
 0x11c   : > { %v436_v33 = vmul.f32 0.5, %v435_v32 }
 0x11e   : > { %v437_v34 = vsub.f32 1.5, %v436_v33 }
 0x120   : > { %v438_v35 = vmul.f32 %v1616_v30, %v437_v34 }
 0x122   : > { %v442_v37 = vsel %vm441_vm4, %v1616_v30, %v438_v35 }
 0x123   : > { %v443_v38 = vmul.f32 %v442_v37, %v426_v12 }
 0x125   : > { %v447_v40 = vmul.f32 %v1606_v36, %v443_v38 }
 0x127   : > { %v451_v41 = vadd.f32 %v1607_v39, %v447_v40 }
 0x129   : > { %v452_v42 = vpack.c.bf16 %v451_v41, %v451_v41 }
 0x12b   : > { %1486 = vmatmul.msk.bf16.vlgmr.msra.gmra.mxu0 %vm414_vm0, %v452_v42  ;;  %1487 = vmatmul.msk.bf16.vlgmr.msra.gmra.mxu1 %vm414_vm0, %v452_v42 }
 0x1a8   : > { %v489_v43 = vpop.f32.mrf.mxu0  ;;  %v502_v44 = vpop.f32.mrf.mxu1 }
 0x1a9   : > { %v506_v45 = vpack.c.bf16 %v502_v44, %v489_v43 }
 0x1ab   : > { %512 = vrot.lane.b32.xlu2 %v506_v45, %s1702_s18  ;;  %508 = vrot.lane.b32.xlu1 %v506_v45, %s1703_s19  ;;  %v751_v52 = vrot.slane %v506_v45, 4  ;;  %v517_v57 = vshrl.u32 %v506_v45, 16 }
 0x1ad   : > { %v758_v60 = vshrl.u32 %v751_v52, 16 }
 0x1b0   : > { %v491_v46 = vpop.f32.mrf.mxu0  ;;  %v504_v47 = vpop.f32.mrf.mxu1 }
 0x1b3   : > { %629 = vrot.lane.b32.xlu2 %v506_v45, %s1704_s20  ;;  %510 = vrot.lane.b32.xlu1 %v506_v45, %s1705_s26 }
 0x205   : > { %v513_v48 = vpop.permute.xlu2 %512 }
 0x206   : > { %635 = vrot.lane.b32.xlu2 %v513_v48, %s1704_s20  ;;  %v754_v61 = vrot.slane %v513_v48, 4  ;;  %v524_v4 = vshrl.u32 %v513_v48, 16 }
 0x208   : > { %v765_v7 = vshrl.u32 %v754_v61, 16 }
 0x21d   : > { %v509_v51 = vpop.permute.xlu1 %508 }
 0x21e   : > { %v518_v53 = vshrl.u32 %v509_v51, 16  ;;  %v752_v54 = vrot.slane %v509_v51, 4  ;;  %631 = vrot.lane.b32.xlu0 %v509_v51, %s1704_s20  ;;  %v516_v56 = vpack.i.b16 %v509_v51, %v506_v45 }
 0x220   : > { %v759_v58 = vshrl.u32 %v752_v54, 16  ;;  %v519_v59 = vpack.i.b16 %v518_v53, %v517_v57  ;;  %v530_v62 = vperm.slane %v516_v56, %v1874_v55  ;;  %v757_v63 = vpack.i.b16 %v752_v54, %v751_v52 }
 0x222   : > { %v760_v0 = vpack.i.b16 %v759_v58, %v758_v60  ;;  %v557_v5 = vperm.slane %v519_v59, %v1874_v55  ;;  %v539_v12 = vrot.slane %v530_v62, 4  ;;  %v771_v13 = vperm.slane %v757_v63, %v1874_v55 }
 0x224   : > { %v797_v14 = vperm.slane %v760_v0, %v1874_v55  ;;  %v565_v20 = vrot.slane %v557_v5, 4  ;;  %v779_v25 = vrot.slane %v771_v13, 4 }
 0x225   : > { %v511_v6 = vpop.permute.xlu1 %510 }
 0x226   : > { %v522_v8 = vpack.i.b16 %v513_v48, %v511_v6  ;;  %v523_v10 = vshrl.u32 %v511_v6, 16  ;;  %v753_v11 = vrot.slane %v511_v6, 4  ;;  %633 = vrot.lane.b32.xlu1 %v511_v6, %s1704_s20  ;;  %v805_v26 = vrot.slane %v797_v14, 4  ;;  %s402_s20 = sand.u32 1, %s1691_s22  }
 0x227   : > { %s1468_s26 = sshll.u32 %s402_s20, 2 }
 0x228   : > { %v525_v16 = vpack.i.b16 %v524_v4, %v523_v10  ;;  %v535_v17 = vperm.slane %v522_v8, %v1874_v55  ;;  %v763_v18 = vpack.i.b16 %v754_v61, %v753_v11  ;;  %v764_v19 = vshrl.u32 %v753_v11, 16  ;;  %s404_s17 = scalar_lea.vmem [#allocation2], %s1468_s26 }
 0x229   : > { %s1402_s18 = sshll.u32 %s404_s17, 4  ;;  %s1403_s18 = int_to_ptr.vmem [resolvable:$true] %s1402_s18 }
 0x22a   : > { %v536_v21 = vrot.slane %v535_v17, 4  ;;  %v540_v22 = vsel %vm537_vm5, %v535_v17, %v539_v12  ;;  %v562_v23 = vperm.slane %v525_v16, %v1874_v55  ;;  %v766_v24 = vpack.i.b16 %v765_v7, %v764_v19 }
 0x22b   : > { %v548_v27 = vperm.slane %v540_v22, %v1881_v15  ;;  %v776_v28 = vperm.slane %v763_v18, %v1874_v55 }
 0x22c   : > { %v538_v29 = vsel %vm537_vm5, %v536_v21, %v530_v62  ;;  %v563_v30 = vrot.slane %v562_v23, 4  ;;  %v566_v31 = vsel %vm537_vm5, %v562_v23, %v565_v20  ;;  %v802_v32 = vperm.slane %v766_v24, %v1874_v55 }
 0x22d   : > { %v544_v33 = vperm.slane %v538_v29, %v1881_v15  ;;  %v551_v34 = vrot.slane %v548_v27, 4  ;;  %v574_v35 = vperm.slane %v566_v31, %v1881_v15  ;;  %v777_v36 = vrot.slane %v776_v28, 4 }
 0x22e   : > { %v564_v37 = vsel %vm537_vm5, %v563_v30, %v557_v5  ;;  %v780_v38 = vsel %vm537_vm5, %v776_v28, %v779_v25  ;;  %v803_v39 = vrot.slane %v802_v32, 4  ;;  %v806_v40 = vsel %vm537_vm5, %v802_v32, %v805_v26 }
 0x22f   : > { %v549_v41 = vrot.slane %v544_v33, 4  ;;  %v552_v42 = vsel %vm537_vm5, 0, %v551_v34  ;;  %v570_v43 = vperm.slane %v564_v37, %v1881_v15  ;;  %v577_v44 = vrot.slane %v574_v35, 4 }
 0x230   : > { %v778_v45 = vsel %vm537_vm5, %v777_v36, %v771_v13  ;;  %v788_v46 = vperm.slane %v780_v38, %v1881_v15  ;;  %v804_v47 = vsel %vm537_vm5, %v803_v39, %v797_v14  ;;  %v814_v51 = vperm.slane %v806_v40, %v1881_v15 }
 0x231   : > { %v575_v48 = vrot.slane %v570_v43, 4  ;;  %v578_v49 = vsel %vm537_vm5, 0, %v577_v44  ;;  %v784_v50 = vperm.slane %v778_v45, %v1881_v15  ;;  %v584_v52 = vrot.slane %v552_v42, 4 }
 0x232   : > { %v791_v53 = vrot.slane %v788_v46, 4  ;;  %v810_v54 = vperm.slane %v804_v47, %v1881_v15  ;;  %v817_v56 = vrot.slane %v814_v51, 4  ;;  %v550_v58 = vsel %vm537_vm5, 0, %v549_v41 }
 0x233   : > { %v789_v57 = vrot.slane %v784_v50, 4  ;;  %v579_v59 = vsel %vm537_vm5, %v551_v34, %v544_v33  ;;  %v603_v60 = vrot.slane %v578_v49, 4  ;;  %v576_v4 = vsel %vm537_vm5, 0, %v575_v48 }
 0x234   : > { %v792_v61 = vsel %vm537_vm5, 0, %v791_v53  ;;  %v815_v62 = vrot.slane %v810_v54, 4  ;;  %v819_v63 = vsel %vm537_vm5, %v791_v53, %v784_v50  ;;  %v818_v3 = vsel %vm537_vm5, 0, %v817_v56 }
 0x235   : > { %v824_v0 = vrot.slane %v792_v61, 4  ;;  %v790_v2 = vsel %vm537_vm5, 0, %v789_v57  ;;  %v838_v6 = vsel %vm537_vm5, %v817_v56, %v810_v54  ;;  %v843_v7 = vrot.slane %v818_v3, 4 }
 0x236   : > { %v816_v5 = vsel %vm537_vm5, 0, %v815_v62  ;;  %v585_v8 = vsel %vm537_vm5, %v584_v52, %v550_v58  ;;  %v598_v12 = vsel %vm537_vm5, %v577_v44, %v570_v43  ;;  %v604_v16 = vsel %vm537_vm5, %v603_v60, %v576_v4  ;;  %v630_v60 = vpop.permute.xlu2 %629 }
 0x237   : > { %v825_v10 = vsel %vm537_vm5, %v824_v0, %v790_v2  ;;  %v589_v11 = vperm.slane %v585_v8, %v1874_v55  ;;  %v844_v14 = vsel %vm537_vm5, %v843_v7, %v816_v5  ;;  %v583_v18 = vperm.slane %v579_v59, %v1874_v55 }
 0x238   : > { %v829_v13 = vperm.slane %v825_v10, %v1874_v55  ;;  %v848_v17 = vperm.slane %v844_v14, %v1874_v55  ;;  %v608_v20 = vperm.slane %v604_v16, %v1874_v55  ;;  %v823_v21 = vperm.slane %v819_v63, %v1874_v55 }
 0x239   : > { %v590_v19 = vrot.slane %v589_v11, 4  ;;  %v842_v23 = vperm.slane %v838_v6, %v1874_v55  ;;  %v602_v26 = vperm.slane %v598_v12, %v1874_v55  ;;  %v640_v63 = vshrl.u32 %v630_v60, 16 }
 0x23a   : > { %v830_v22 = vrot.slane %v829_v13, 4  ;;  %v849_v24 = vrot.slane %v848_v17, 4  ;;  %v609_v27 = vrot.slane %v608_v20, 4 }
 0x23b   : > { %v591_v25 = vsel %vm537_vm5, %v590_v19, %v583_v18 }
 0x23c   : > { %v831_v28 = vsel %vm537_vm5, %v830_v22, %v823_v21  ;;  %v1930_v29 = vperm.slane %v591_v25, %v1881_v15  ;;  %v850_v31 = vsel %vm537_vm5, %v849_v24, %v842_v23  ;;  %v610_v32 = vsel %vm537_vm5, %v609_v27, %v602_v26 }
 0x23d   : > { %v1933_v30 = vperm.slane %v831_v28, %v1881_v15  ;;  %v1938_v33 = vperm.slane %v850_v31, %v1881_v15  ;;  %v1941_v34 = vperm.slane %v610_v32, %v1881_v15 }
 0x23e   : > { %v596_v35 = vrot.slane %v1930_v29, 4  ;;  %v620_v38 = vshrl.u32 %v1930_v29, 16 }
 0x23f   : > { %v860_v36 = vshrl.u32 %v1933_v30, 16  ;;  %v836_v37 = vrot.slane %v1933_v30, 4  ;;  %v859_v39 = vpack.i.b16 %v1938_v33, %v1933_v30  ;;  %v861_v40 = vshrl.u32 %v1938_v33, 16 }
 0x240   : > { %v855_v41 = vrot.slane %v1938_v33, 4  ;;  %v619_v42 = vpack.i.b16 %v1941_v34, %v1930_v29  ;;  %v621_v44 = vshrl.u32 %v1941_v34, 16  ;;  %v1958_v45 = vsel %vm537_vm5, 0, %v596_v35 }
 0x241   : > { %v1954_v43 = vsel %vm537_vm5, 0, %v836_v37  ;;  %v615_v46 = vrot.slane %v1941_v34, 4  ;;  %v1961_v47 = vpack.i.b16 %v861_v40, %v860_v36  ;;  %v626_v56 = vshrl.u32 %v1958_v45, 16 }
 0x242   : > { %v1964_v48 = vsel %vm537_vm5, 0, %v855_v41  ;;  %v866_v49 = vshrl.u32 %v1954_v43, 16  ;;  %v1970_v52 = vpack.i.b16 %v621_v44, %v620_v38 }
 0x243   : > { %v865_v50 = vpack.i.b16 %v1964_v48, %v1954_v43  ;;  %v867_v51 = vshrl.u32 %v1964_v48, 16  ;;  %v1973_v53 = vsel %vm537_vm5, 0, %v615_v46 }
 0x244   : > { %v625_v54 = vpack.i.b16 %v1973_v53, %v1958_v45  ;;  %v627_v57 = vshrl.u32 %v1973_v53, 16 }
 0x245   : > { %v1979_v58 = vpack.i.b16 %v867_v51, %v866_v49  ;;  %v1038_v30 = vsel %vm998_vm7, %v865_v50, 0 }
 0x246   : > { %v1981_v59 = vpack.i.b16 %v627_v57, %v626_v56 }
 0x260   : > { %v636_v3 = vpop.permute.xlu2 %635 }
 0x261   : > { %v647_v6 = vshrl.u32 %v636_v3, 16 }
 0x290   : > { %v632_v61 = vpop.permute.xlu0 %631 }
 0x291   : > { %v641_v62 = vshrl.u32 %v632_v61, 16  ;;  %v639_v0 = vpack.i.b16 %v632_v61, %v630_v60 }
 0x293   : > { %v642_v2 = vpack.i.b16 %v641_v62, %v640_v63  ;;  %v653_v4 = vperm.slane %v639_v0, %v1874_v55 }
 0x295   : > { %v679_v7 = vperm.slane %v642_v2, %v1874_v55  ;;  %v661_v11 = vrot.slane %v653_v4, 4 }
 0x297   : > { %v687_v14 = vrot.slane %v679_v7, 4 }
 0x298   : > { %v634_v5 = vpop.permute.xlu1 %633 }
 0x299   : > { %v645_v8 = vpack.i.b16 %v636_v3, %v634_v5  ;;  %v646_v10 = vshrl.u32 %v634_v5, 16 }
 0x29b   : > { %v648_v12 = vpack.i.b16 %v647_v6, %v646_v10  ;;  %v658_v13 = vperm.slane %v645_v8, %v1874_v55 }
 0x29d   : > { %v659_v16 = vrot.slane %v658_v13, 4  ;;  %v662_v17 = vsel %vm537_vm5, %v658_v13, %v661_v11  ;;  %v684_v18 = vperm.slane %v648_v12, %v1874_v55 }
 0x29e   : > { %v670_v19 = vperm.slane %v662_v17, %v1881_v15 }
 0x29f   : > { %v660_v20 = vsel %vm537_vm5, %v659_v16, %v653_v4  ;;  %v685_v21 = vrot.slane %v684_v18, 4  ;;  %v688_v22 = vsel %vm537_vm5, %v684_v18, %v687_v14  ;;  %v1000_v16 = vsel %vm998_vm7, %v859_v39, 0 }
 0x2a0   : > { %v666_v23 = vperm.slane %v660_v20, %v1881_v15  ;;  %v673_v24 = vrot.slane %v670_v19, 4  ;;  %v696_v25 = vperm.slane %v688_v22, %v1881_v15  ;;  %v1019_v22 = vsel %vm998_vm7, %v1961_v47, 0 }
 0x2a1   : > { %v686_v26 = vsel %vm537_vm5, %v685_v21, %v679_v7  ;;  %v1057_v39 = vsel %vm998_vm7, %v1979_v58, 0 }
 0x2a2   : > { %v671_v27 = vrot.slane %v666_v23, 4  ;;  %v674_v28 = vsel %vm537_vm5, 0, %v673_v24  ;;  %v692_v31 = vperm.slane %v686_v26, %v1881_v15  ;;  %v699_v32 = vrot.slane %v696_v25, 4 }
 0x2a3   : > { %v706_v35 = vrot.slane %v674_v28, 4  ;;  %v701_v41 = vsel %vm537_vm5, %v673_v24, %v666_v23 }
 0x2a4   : > { %v672_v36 = vsel %vm537_vm5, 0, %v671_v27  ;;  %v697_v37 = vrot.slane %v692_v31, 4  ;;  %v700_v38 = vsel %vm537_vm5, 0, %v699_v32  ;;  %v720_v51 = vsel %vm537_vm5, %v699_v32, %v692_v31 }
 0x2a5   : > { %v725_v40 = vrot.slane %v700_v38, 4  ;;  %v707_v44 = vsel %vm537_vm5, %v706_v35, %v672_v36  ;;  %v705_v57 = vperm.slane %v701_v41, %v1874_v55  ;;  %v724_v63 = vperm.slane %v720_v51, %v1874_v55 }
 0x2a6   : > { %v698_v46 = vsel %vm537_vm5, 0, %v697_v37  ;;  %v711_v49 = vperm.slane %v707_v44, %v1874_v55 }
 0x2a7   : > { %v726_v56 = vsel %vm537_vm5, %v725_v40, %v698_v46 }
 0x2a8   : > { %v712_v60 = vrot.slane %v711_v49, 4  ;;  %v730_v61 = vperm.slane %v726_v56, %v1874_v55 }
 0x2aa   : > { %v713_v62 = vsel %vm537_vm5, %v712_v60, %v705_v57  ;;  %v731_v0 = vrot.slane %v730_v61, 4 }
 0x2ab   : > { %v717_v2 = vperm.slane %v713_v62, %v1881_v15 }
 0x2ac   : > { %v732_v3 = vsel %vm537_vm5, %v731_v0, %v724_v63 }
 0x2ad   : > { %v736_v4 = vperm.slane %v732_v3, %v1881_v15  ;;  %v718_v5 = vrot.slane %v717_v2, 4  ;;  %v742_v6 = vshrl.u32 %v717_v2, 16 }
 0x2af   : > { %v741_v7 = vpack.i.b16 %v736_v4, %v717_v2  ;;  %v743_v8 = vshrl.u32 %v736_v4, 16  ;;  %v719_v10 = vsel %vm537_vm5, 0, %v718_v5  ;;  %v737_v11 = vrot.slane %v736_v4, 4 }
 0x2b0   : > { %v748_v18 = vshrl.u32 %v719_v10, 16 }
 0x2b1   : > { %v874_v12 = vsel %vm869_vm6, %v741_v7, 0  ;;  %v744_v13 = vpack.i.b16 %v743_v8, %v742_v6  ;;  %v738_v14 = vsel %vm537_vm5, 0, %v737_v11 }
 0x2b2   : > { %883 = vmatpush.bf16.xpose.msra.mxu2 %v874_v12  ;;  %v747_v17 = vpack.i.b16 %v738_v14, %v719_v10  ;;  %v749_v19 = vshrl.u32 %v738_v14, 16 }
 0x2b3   : > { %v893_v20 = vsel %vm869_vm6, %v744_v13, 0 }
 0x2b4   : > { %902 = vmatpush.bf16.xpose.msra.mxu3 %v893_v20  ;;  %v912_v21 = vsel %vm869_vm6, %v747_v17, 0  ;;  %v750_v23 = vpack.i.b16 %v749_v19, %v748_v18 }
 0x2b5   : > { %921 = vmatpush.bf16.xpose.msrb.mxu0 %v912_v21 }
 0x2b6   : > { %v931_v33 = vsel %vm869_vm6, %v750_v23, 0 }
 0x2b7   : > { %940 = vmatpush.bf16.xpose.msrb.mxu1 %v931_v33 }
 0x2b9   : > { %1488 = vmatmul.msk.bf16.vlgmr.msra.gmra.mxu2 %vm869_vm6, %v619_v42 }
 0x2ba   : > { %1009 = vmatpush.bf16.msrb.mxu2 %v1000_v16 }
 0x2bb   : > { %1489 = vmatmul.msk.bf16.vlgmr.msra.gmra.mxu3 %vm869_vm6, %v1970_v52 }
 0x2bc   : > { %1028 = vmatpush.bf16.msrb.mxu3 %v1019_v22  ;;  %1490 = vmatmul.msk.bf16.vlgmr.msrb.gmra.mxu0 %vm869_vm6, %v625_v54 }
 0x2bd   : > { %1047 = vmatpush.bf16.msra.mxu0 %v1038_v30 }
 0x2be   : > { %1491 = vmatmul.msk.bf16.vlgmr.msrb.gmra.mxu1 %vm869_vm6, %v1981_v59 }
 0x2bf   : > { %1066 = vmatpush.bf16.msra.mxu1 %v1057_v39 }
 0x339   : > { %v923_v43 = vpop.f32.mrf.mxu0 }
 0x33a   : > { %v953_v47 = vsel %vm946_vm8, %v923_v43, -inf }
 0x33b   : > { %v942_v48 = vpop.f32.mrf.mxu1  ;;  %954 = vmax.xlane.f32.xlu0 %v953_v47 }
 0x33c   : > { %v885_v29 = vpop.f32.mrf.mxu2  ;;  %v956_v58 = vsel %vm946_vm8, %v942_v48, -inf }
 0x33d   : > { %v947_v34 = vsel %vm946_vm8, %v885_v29, -inf }
 0x33e   : > { %v904_v42 = vpop.f32.mrf.mxu3  ;;  %948 = vmax.xlane.f32.xlu1 %v947_v34 }
 0x33f   : > { %v950_v50 = vsel %vm946_vm8, %v904_v42, -inf }
 0x340   : > { %951 = vmax.xlane.f32.xlu2 %v950_v50 }
 0x341   : > { %v925_v45 = vpop.f32.mrf.mxu0 }
 0x343   : > { %v944_v52 = vpop.f32.mrf.mxu1 }
 0x344   : > { %v887_v53 = vpop.f32.mrf.mxu2 }
 0x346   : > { %v906_v54 = vpop.f32.mrf.mxu3 }
 0x348   : > { %957 = vmax.xlane.f32.xlu2 %v956_v58 }
 0x3ae   : > { %v955_v59 = vpop.xlane.xlu0 %954 }
 0x3af   : > { %v961_v27 = vsub.f32 %v923_v43, %v955_v59 }
 0x3b1   : > { %v949_v24 = vpop.xlane.xlu1 %948  ;;  %v967_v35 = vmul.f32 1.442695, %v961_v27 }
 0x3b2   : > { %v959_v25 = vsub.f32 %v885_v29, %v949_v24 }
 0x3b3   : > { %v952_v26 = vpop.xlane.xlu2 %951 }
 0x3b4   : > { %v963_v28 = vmul.f32 1.442695, %v959_v25  ;;  %v960_v31 = vsub.f32 %v904_v42, %v952_v26 }
 0x3b6   : > { %1617 = vpow2.f32 %v963_v28  ;;  %v965_v32 = vmul.f32 1.442695, %v960_v31 }
 0x3b8   : > { %1619 = vpow2.f32 %v965_v32 }
 0x3b9   : > { %1621 = vpow2.f32 %v967_v35 }
 0x3bb   : > { %v958_v36 = vpop.xlane.xlu2 %957 }
 0x3bc   : > { %v1618_v37 = vpop.eup %1617  ;;  %v962_v38 = vsub.f32 %v942_v48, %v958_v36 }
 0x3bd   : > { %v971_v40 = vsel %vm946_vm8, %v1618_v37, 0.0 }
 0x3be   : > { %v1620_v41 = vpop.eup %1619  ;;  %v969_v44 = vmul.f32 1.442695, %v962_v38  ;;  %972 = vadd.xlane.f32.xlu1 %v971_v40 }
 0x3bf   : > { %v974_v46 = vsel %vm946_vm8, %v1620_v41, 0.0  ;;  %v1622_v49 = vpop.eup %1621 }
 0x3c0   : > { %1623 = vpow2.f32 %v969_v44  ;;  %975 = vadd.xlane.f32.xlu2 %v974_v46  ;;  %v977_v51 = vsel %vm946_vm8, %v1622_v49, 0.0 }
 0x3c6   : > { %v1624_v56 = vpop.eup %1623  ;;  %978 = vadd.xlane.f32.xlu1 %v977_v51 }
 0x3c7   : > { %v980_v57 = vsel %vm946_vm8, %v1624_v56, 0.0 }
 0x3c8   : > { %981 = vadd.xlane.f32.xlu0 %v980_v57 }
 0x431   : > { %v973_v60 = vpop.xlane.xlu1 %972 }
 0x432   : > { %1625 = vrcp.f32 %v973_v60 }
 0x433   : > { %v976_v61 = vpop.xlane.xlu2 %975 }
 0x434   : > { %1627 = vrcp.f32 %v976_v61 }
 0x438   : > { %v1626_v62 = vpop.eup %1625 }
 0x439   : > { %v987_v63 = vmul.f32 %v1626_v62, %v1618_v37  ;;  %v979_v0 = vpop.xlane.xlu1 %978 }
 0x43a   : > { %v1628_v2 = vpop.eup %1627  ;;  %1629 = vrcp.f32 %v979_v0 }
 0x43b   : > { %v988_v3 = vmul.f32 %v1628_v2, %v1620_v41  ;;  %v982_v4 = vpop.xlane.xlu0 %981  ;;  %v991_v5 = vpack.c.bf16 %v987_v63, %v987_v63 }
 0x43c   : > { %1631 = vrcp.f32 %v982_v4 }
 0x43d   : > { %1492 = vmatmul.msk.bf16.vlgmr.msrb.gmra.mxu2 %vm946_vm8, %v991_v5  ;;  %v992_v6 = vpack.c.bf16 %v988_v3, %v988_v3 }
 0x43f   : > { %1493 = vmatmul.msk.bf16.vlgmr.msrb.gmra.mxu3 %vm946_vm8, %v992_v6 }
 0x440   : > { %v1630_v7 = vpop.eup %1629 }
 0x441   : > { %v989_v8 = vmul.f32 %v1630_v7, %v1622_v49 }
 0x442   : > { %v1632_v10 = vpop.eup %1631 }
 0x443   : > { %v993_v11 = vpack.c.bf16 %v989_v8, %v989_v8  ;;  %v990_v12 = vmul.f32 %v1632_v10, %v1624_v56 }
 0x445   : > { %v994_v13 = vpack.c.bf16 %v990_v12, %v990_v12  ;;  %1494 = vmatmul.msk.bf16.vlgmr.msra.gmra.mxu0 %vm946_vm8, %v993_v11 }
 0x447   : > { %1495 = vmatmul.msk.bf16.vlgmr.msra.gmra.mxu1 %vm946_vm8, %v994_v13 }
 0x4c0   : > { %v1011_v14 = vpop.f32.mrf.mxu2 }
 0x4c1   : > { %v1075_v16 = vrot.slane %v1011_v14, 4 }
 0x4c2   : > { %v1030_v17 = vpop.f32.mrf.mxu3  ;;  %v1049_v18 = vpop.f32.mrf.mxu0 }
 0x4c3   : > { %v1087_v19 = vrot.slane %v1030_v17, 4  ;;  %v1072_v20 = vrot.slane %v1049_v18, 4  ;;  %v1076_v21 = vsel %vm537_vm5, %v1049_v18, %v1075_v16 }
 0x4c4   : > { %v1084_v22 = vperm.slane %v1076_v21, %v1874_v55  ;;  %v1068_v23 = vpop.f32.mrf.mxu1 }
 0x4c5   : > { %v1074_v30 = vsel %vm537_vm5, %v1072_v20, %v1011_v14  ;;  %v1085_v33 = vrot.slane %v1068_v23, 4  ;;  %v1088_v39 = vsel %vm537_vm5, %v1068_v23, %v1087_v19 }
 0x4c6   : > { %v1080_v43 = vperm.slane %v1074_v30, %v1874_v55  ;;  %v1111_v47 = vrot.slane %v1084_v22, 4  ;;  %v1096_v48 = vperm.slane %v1088_v39, %v1874_v55  ;;  %v1550_v30 = vld [vmem:[%s2189_s4 + $0x18] sm:$0xff]  ;;  %v1547_v39 = vld [vmem:[%s2189_s4] sm:$0xff] }
 0x4c7   : > { %v1086_v29 = vsel %vm537_vm5, %v1085_v33, %v1030_v17  ;;  %1244 = vmatpush.bf16.msra.mxu2 %v1550_v30  ;;  %v1548_v33 = vld [vmem:[%s2189_s4 + $0x8] sm:$0xff] }
 0x4c8   : > { %v1099_v34 = vrot.slane %v1080_v43, 4  ;;  %v1092_v42 = vperm.slane %v1086_v29, %v1874_v55  ;;  %v1109_v50 = vrot.slane %v1096_v48, 4  ;;  %v1112_v45 = vsel %vm537_vm5, %v1096_v48, %v1111_v47  ;;  %v1013_v52 = vpop.f32.mrf.mxu2 }
 0x4c9   : > { %v1120_v53 = vperm.slane %v1112_v45, %v1881_v15  ;;  %v1608_v45 = vld [vmem:[%s2190_s5] ss:$0 sm:$0xff] }
 0x4ca   : > { %v1097_v54 = vrot.slane %v1092_v42, 4  ;;  %v1100_v58 = vsel %vm537_vm5, %v1092_v42, %v1099_v34  ;;  %v1110_v59 = vsel %vm537_vm5, %v1109_v50, %v1084_v22  ;;  %v1032_v24 = vpop.f32.mrf.mxu3  ;;  %v1051_v25 = vpop.f32.mrf.mxu0 }
 0x4cb   : > { %v1108_v26 = vperm.slane %v1100_v58, %v1881_v15  ;;  %v1116_v27 = vperm.slane %v1110_v59, %v1881_v15  ;;  %v1127_v28 = vrot.slane %v1120_v53, 4 }
 0x4cc   : > { %v1098_v31 = vsel %vm537_vm5, %v1097_v54, %v1080_v43  ;;  %v1070_v32 = vpop.f32.mrf.mxu1 }
 0x4cd   : > { %v1104_v35 = vperm.slane %v1098_v31, %v1881_v15  ;;  %v1123_v36 = vrot.slane %v1108_v26, 4  ;;  %v1125_v37 = vrot.slane %v1116_v27, 4  ;;  %v1128_v38 = vsel %vm537_vm5, 0.0, %v1127_v28  ;;  %v1552_v31 = vld [vmem:[%s2193_s8 + $0x8] sm:$0xff] }
 0x4ce   : > { %v1140_v40 = vsel %vm537_vm5, %v1127_v28, %v1116_v27  ;;  %v1145_v41 = vrot.slane %v1128_v38, 4  ;;  %1316 = vmatpush.bf16.msra.mxu3 %v1552_v31 }
 0x4cf   : > { %v1121_v44 = vrot.slane %v1104_v35, 4  ;;  %v1124_v46 = vsel %vm537_vm5, 0.0, %v1123_v36  ;;  %v1126_v49 = vsel %vm537_vm5, 0.0, %v1125_v37  ;;  %v1144_v51 = vperm.slane %v1140_v40, %v1874_v55 }
 0x4d0   : > { %v1134_v56 = vrot.slane %v1124_v46, 4  ;;  %v1129_v57 = vsel %vm537_vm5, %v1123_v36, %v1104_v35  ;;  %v1146_v60 = vsel %vm537_vm5, %v1145_v41, %v1126_v49  ;;  %v1609_v49 = vld [vmem:[%s2191_s6] ss:$0 sm:$0xff] }
 0x4d1   : > { %v1122_v61 = vsel %vm537_vm5, 0.0, %v1121_v44  ;;  %v1133_v62 = vperm.slane %v1129_v57, %v1874_v55  ;;  %v1150_v63 = vperm.slane %v1146_v60, %v1874_v55  ;;  %v1165_v0 = vrot.slane %v1144_v51, 4 }
 0x4d2   : > { %v1135_v2 = vsel %vm537_vm5, %v1134_v56, %v1122_v61 }
 0x4d3   : > { %v1139_v3 = vperm.slane %v1135_v2, %v1874_v55  ;;  %v1153_v4 = vrot.slane %v1133_v62, 4  ;;  %v1166_v5 = vsel %vm537_vm5, %v1150_v63, %v1165_v0  ;;  %v1163_v6 = vrot.slane %v1150_v63, 4  ;;  %v1555_v63 = vld [vmem:[%s2195_s10 + $0x10] sm:$0xff]  ;;  %v1554_v0 = vld [vmem:[%s2195_s10 + $0x8] sm:$0xff]  ;;  %v1553_v2 = vld [vmem:[%s2195_s10] sm:$0xff] }
 0x4d4   : > { %v1174_v7 = vperm.slane %v1166_v5, %v1881_v15 }
 0x4d5   : > { %v1154_v8 = vsel %vm537_vm5, %v1139_v3, %v1153_v4  ;;  %v1151_v10 = vrot.slane %v1139_v3, 4  ;;  %v1164_v11 = vsel %vm537_vm5, %v1163_v6, %v1144_v51  ;;  %v1611_v3 = vld [vmem:[%s2194_s9] ss:$0 sm:$0xff] }
 0x4d6   : > { %v1162_v12 = vperm.slane %v1154_v8, %v1881_v15  ;;  %v1179_v13 = vrot.slane %v1174_v7, 4  ;;  %v1170_v14 = vperm.slane %v1164_v11, %v1881_v15 }
 0x4d7   : > { %v1152_v16 = vsel %vm537_vm5, %v1151_v10, %v1133_v62  ;;  %v1556_v62 = vld [vmem:[%s2195_s10 + $0x18] sm:$0xff] }
 0x4d8   : > { %v1180_v55 = vsel %vm537_vm5, %v1179_v13, %v1162_v12  ;;  %v1181_v17 = vrot.slane %v1162_v12, 4  ;;  %v1158_v18 = vperm.slane %v1152_v16, %v1881_v15  ;;  %v1175_v19 = vrot.slane %v1170_v14, 4  ;;  %v1549_v15 = vld [vmem:[%s2189_s4 + $0x10] sm:$0xff]  ;;  %1376 = vmatpush.bf16.msrb.mxu0 %v1556_v62 }
 0x4d9   : > { %1188 = vrot.lane.b32.xlu1 %v1180_v55, %s1708_s28  ;;  %1245 = vmatpush.bf16.msra.mxu2 %v1549_v15  ;;  %s1540_s28 = sshll.u32 %s1797_s25, 2  ;;  %s1390_s25 = scalar_lea.sflag [#allocation3], %s402_s20 }
 0x4da   : > { %v1182_v20 = vsel %vm537_vm5, %v1174_v7, %v1181_v17  ;;  %v1177_v21 = vrot.slane %v1158_v18, 4  ;;  %v1176_v22 = vsel %vm537_vm5, %v1175_v19, %v1158_v18  ;;  %v1612_v18 = vld [vmem:[%s2196_s11] ss:$0 sm:$0xff]  ;;  %s1400_s16 = scalar_lea.hbm %s2197_s12, %s1540_s28 }
 0x4db   : > { %1192 = vrot.lane.b32.xlu0 %v1182_v20, %s1709_s29  ;;  %s1404_s19 = sshll.u32 %s1400_s16, 4  ;;  %s1405_s19 = int_to_ptr.hbm [resolvable:$true] %s1404_s19 }
 0x4dc   : > { %v1178_v23 = vsel %vm537_vm5, %v1170_v14, %v1177_v21  ;;  %1377 = vmatpush.bf16.msrb.mxu0 %v1555_v63  ;;  %s1651_s29 = sshra.s32 %s1405_s19, 4  ;;  %s1652_s29 = int_to_ptr.hbm [resolvable:$true] %s1651_s29 }
 0x4dd   : > { %1184 = vrot.lane.b32.xlu2 %v1178_v23, %s1710_s15  ;;  %1246 = vmatpush.bf16.msra.mxu2 %v1548_v33  ;;  %s1653_s15 = scalar_lea.hbm %s1652_s29, 4  ;;  %p1658_p0 = scmp.lt.s32.totalorder %s1652_s29, %s2197_s12 }
 0x4de   : > { %p1654_p11 = scmp.ne.s32.totalorder %s1652_s29, %s1653_s15  ;;  %p1659_p1 = scmp.lt.s32.totalorder %s1657_s0, %s1653_s15 }
 0x4e0   : > { %1378 = vmatpush.bf16.msrb.mxu0 %v1554_v0  ;;  %p1655_p12 = pnand %p1654_p11, %p1814_p5  ;;  %p1660_p2 = por %p1659_p1, %p1658_p0 }
 0x4e1   : > { %1247 = vmatpush.bf16.msra.mxu2 %v1547_v39 }
 0x4e2   : > { %p1656_p13 = pneg %p1655_p12 }
 0x4e4   : > { %1379 = vmatpush.bf16.msrb.mxu0 %v1553_v2  ;;  %p1661_p3 = pnand %p1660_p2, %p1656_p13 }
 0x537   : > { %v1185_v43 = vpop.permute.xlu2 %1184 }
 0x538   : > { %v1195_v47 = vsel %vm869_vm6, %v1176_v22, %v1185_v43 }
 0x54b   : > { %v1189_v48 = vpop.permute.xlu1 %1188 }
 0x54c   : > { %v1196_v29 = vsel %vm414_vm0, %v1195_v47, %v1189_v48 }
 0x54d   : > { %v1193_v34 = vpop.permute.xlu0 %1192 }
 0x54e   : > { %v1198_v42 = vsel %vm1197_vm9, %v1196_v29, %v1193_v34 }
 0x54f   : > { %v1199_v50 = vpack.c.bf16 %v1198_v42, %v1198_v42 }
 0x551   : > { %1512 = vmatmul.msk.bf16.vlgmr.msra.gmra.mxu2 %vm1236_vm10, %v1199_v50 }
 0x5d4   : > { %v1249_v52 = vpop.f32.mrf.mxu2 }
 0x5d5   : > { %v1250_v53 = vadd.f32 %v1608_v45, %v1249_v52 }
 0x5d7   : > { %v2112_v54 = vadd.f32 %v1250_v53, %v1829_v1  ;;  %v1551_v1 = vld [vmem:[%s2193_s8] sm:$0xff] }
 0x5d8   : > { %1317 = vmatpush.bf16.msra.mxu3 %v1551_v1 }
 0x5d9   : > { %v1256_v58 = vsel %vm414_vm0, %v2112_v54, 0.0 }
 0x5da   : > { %1257 = vadd.xlane.f32.xlu2 %v1256_v58 }
 0x5dc   : > { %v1251_v59 = vpop.f32.mrf.mxu2 }
 0x64d   : > { %v1258_v24 = vpop.xlane.xlu2 %1257 }
 0x64e   : > { %v1259_v25 = vmul.f32 %v1258_v24, %v1833_v9 }
 0x650   : > { %v1260_v26 = vsub.f32 %v2112_v54, %v1259_v25 }
 0x652   : > { %v1261_v27 = vmul.f32 %v1260_v26, %v1260_v26 }
 0x654   : > { %v1262_v28 = vsel %vm414_vm0, %v1261_v27, 0.0 }
 0x655   : > { %1263 = vadd.xlane.f32.xlu0 %v1262_v28 }
 0x6c8   : > { %v1264_v32 = vpop.xlane.xlu0 %1263 }
 0x6c9   : > { %v1265_v35 = vmul.f32 %v1264_v32, %v1833_v9  ;;  %v1610_v9 = vld [vmem:[%s2192_s7] ss:$0 sm:$0xff] }
 0x6cb   : > { %v1266_v36 = vadd.f32 1e-05, %v1265_v35 }
 0x6cd   : > { %1633 = vrsqrt.f32 %v1266_v36  ;;  %vm1273_vm12 = vweird.f32 %v1266_v36 }
 0x6d3   : > { %v1634_v37 = vpop.eup %1633 }
 0x6d4   : > { %v1268_v38 = vmul.f32 %v1634_v37, %v1266_v36  ;;  %vm1274_vm11 = vweird.f32 %v1634_v37 }
 0x6d5   : > { %vm1275_vm13 = vmor %vm1273_vm12, %vm1274_vm11 }
 0x6d6   : > { %v1269_v40 = vmul.f32 %v1634_v37, %v1268_v38 }
 0x6d8   : > { %v1270_v41 = vmul.f32 0.5, %v1269_v40 }
 0x6da   : > { %v1271_v44 = vsub.f32 1.5, %v1270_v41 }
 0x6dc   : > { %v1272_v46 = vmul.f32 %v1634_v37, %v1271_v44 }
 0x6de   : > { %v1276_v51 = vsel %vm1275_vm13, %v1634_v37, %v1272_v46 }
 0x6df   : > { %v1277_v56 = vmul.f32 %v1276_v51, %v1260_v26 }
 0x6e1   : > { %v1281_v57 = vmul.f32 %v1609_v49, %v1277_v56 }
 0x6e3   : > { %v1285_v60 = vadd.f32 %v1610_v9, %v1281_v57 }
 0x6e5   : > { %v1286_v61 = vpack.c.bf16 %v1285_v60, %v1285_v60 }
 0x6e7   : > { %1521 = vmatmul.msk.bf16.vlgmr.msra.gmra.mxu3 %vm414_vm0, %v1286_v61 }
 0x76a   : > { %v1319_v4 = vpop.f32.mrf.mxu3 }
 0x76b   : > { %v1320_v5 = vadd.f32 %v1611_v3, %v1319_v4 }
 0x76d   : > { %v1324_v6 = vmul.f32 0.044715, %v1320_v5  ;;  %v1323_v14 = vmul.f32 0.5, %v1320_v5 }
 0x76f   : > { %v1325_v7 = vmul.f32 %v1324_v6, %v1320_v5 }
 0x771   : > { %v1326_v8 = vmul.f32 %v1325_v7, %v1320_v5 }
 0x772   : > { %v1321_v10 = vpop.f32.mrf.mxu3 }
 0x773   : > { %v1327_v11 = vadd.f32 %v1326_v8, %v1320_v5 }
 0x775   : > { %v1328_v12 = vmul.f32 0.7978846, %v1327_v11 }
 0x777   : > { %1635 = vtanh.f32 %v1328_v12 }
 0x77d   : > { %v1636_v13 = vpop.eup %1635 }
 0x77e   : > { %v1330_v16 = vadd.f32 1.0, %v1636_v13 }
 0x780   : > { %v1331_v55 = vmul.f32 %v1330_v16, %v1323_v14 }
 0x782   : > { %v1332_v17 = vpack.c.bf16 %v1331_v55, %v1331_v55 }
 0x784   : > { %1538 = vmatmul.msk.bf16.vlgmr.msrb.gmra.mxu0 %vm1236_vm10, %v1332_v17 }
 0x801   : > { %v1381_v19 = vpop.f32.mrf.mxu0 }
 0x802   : > { %v1382_v20 = vadd.f32 %v1612_v18, %v1381_v19 }
 0x804   : > { %v1385_v21 = vadd.f32 %v1382_v20, %v2112_v54 }
 0x806   : > { %v1386_v22 = vpack.c.bf16 %v1385_v21, %v1385_v21 }
 0x808   : > { %1388 = vst.msk [vmem:[%s404_s17] sm:$0xf] %vm1387_vm14, %v1386_v22 }
 0x809   : > { %v1383_v23 = vpop.f32.mrf.mxu0 }
 0x80a   : > { %1664 = shalt.err (!%p1661_p3)
}
 0x80b   : > { %1557 = dma.vmem_to_hbm [thread:$0]  (%p1814_p5), %s1403_s18, 64, %s1405_s19, %s1390_s25  }
 0x80c PF: > { %p1563_p4 = scmp.ge.s32.totalorder %s1699_s24, 2  ;;  %s1416_s20 = sand.u32 1, %s1687_s21  }
 0x80d   : > { %s1417_s17 = scalar_lea.sflag [#allocation3], %s1416_s20 }
 0x80e   : > { %p1560_p7 = pnand %p1563_p4, %p1818_p6 }
 0x810   : > { %p1561_p8 = pneg %p1560_p7 }
 0x812   : > { %1682 = dma.done.wait (%p1561_p8), %s1417_s17, 64  }
 0x813   : > { %1684 = vsyncadd (%p1561_p8), %s1417_s17, 4294967232  ;;  %s2203_s29 = sld [smem:[#allocation5_spill]]  ;;  %p22_p9 = scmp.ge.s32.totalorder %s1801_s27, 4  }
 0x814   : > { %s2204_s21 = smov %s1691_s22  ;;  %s2205_s22 = smov %s1695_s23 }
 0x815   : > { %s2207_s24 = smov %s1801_s27  ;;  %24 = sbr.rel (!%p22_p9) target bundleno = 5 (0x5), region = 103 }
 0x819   : > { %s2206_s23 = smov %s2203_s29 }
 0x81a   :  { %1423 = vsyncpa [#allocation3], 1 }
 0x81b   :  { %1425 = vsyncpa [#allocation3 + $0x1], 1 }

</bundles_post_ra>
